<compile_context>
chip_gen: v7x
topology: tpu7x:2x2x1
jax: 0.10.0
libtpu: 0.0.40
codegen_flags: <defaults>
</compile_context>

<pallas_src>
import functools

import jax
import jax.numpy as jnp
from jax.experimental import pallas as pl
from jax.experimental.pallas import tpu as pltpu


def mixvpr_kernel(x_ref, w1t_ref, b1_ref, w2t_ref, b2_ref, wc_ref, bias_ref,
                  wrt_ref, out_ref, *, mix_depth, bt, c):
    hw = x_ref.shape[-1]
    inv_hw = 1.0 / hw
    eps = 1e-5                                              # nn.LayerNorm default

    # f32 residual accumulator; Bt samples stacked along the row (M) dim.
    x = x_ref[...].astype(jnp.float32)                      # (Bt*C, HW)

    # FeatureMixerLayer stack (LayerNorm affine folded into w1/b1 wrapper-side).
    for d in range(mix_depth):
        s1 = jnp.sum(x, axis=-1, keepdims=True) * inv_hw        # mean
        s2 = jnp.sum(x * x, axis=-1, keepdims=True) * inv_hw    # E[x^2]
        var = jnp.maximum(s2 - s1 * s1, 0.0)
        xn = (x - s1) * jax.lax.rsqrt(var + eps)
        h = jnp.dot(xn.astype(jnp.bfloat16), w1t_ref[d],
                    preferred_element_type=jnp.float32) + b1_ref[d]
        h = jnp.maximum(h, 0.0)                                  # ReLU
        x = x + (jnp.dot(h.astype(jnp.bfloat16), w2t_ref[d],
                         preferred_element_type=jnp.float32) + b2_ref[d])

    # Reordered projections: t = x @ Wr^T first (R << HW), then o = Wc @ t.
    t = jnp.dot(x.astype(jnp.bfloat16), wrt_ref[...],
                preferred_element_type=jnp.float32)              # (Bt*C, R)

    for b in range(bt):                                          # static unroll
        t_b = t[b * c:(b + 1) * c, :].astype(jnp.bfloat16)       # (C, R)
        o_b = jnp.dot(wc_ref[...], t_b,
                      preferred_element_type=jnp.float32) + bias_ref[...]  # (OC, R)
        # F.normalize(flatten, p=2, dim=-1): global L2 over all OC*R elements.
        nrm2 = jnp.sum(o_b * o_b, axis=(0, 1), keepdims=True)
        inv = jax.lax.rsqrt(jnp.maximum(nrm2, 1e-24))            # == 1/max(||o||, 1e-12)
        out_ref[b] = o_b * inv


def _pick_batch_block(b, max_bt=8):
    bt = min(b, max_bt)
    while b % bt:
        bt -= 1
    return bt


def mixvpr_forward(x, params, *, mix_depth, max_batch_block=8):
    """x: (B, C, H, W) float32. Returns (B, out_channels * out_rows) float32."""
    ln_w, ln_b, w1, b1, w2, b2, wc, bc, wr, br = params
    B, C, H, W = x.shape
    HW = H * W
    HWm = w1.shape[1]
    OC = wc.shape[0]
    R = wr.shape[0]
    bt = _pick_batch_block(B, max_batch_block)

    # ---- wrapper-side layout / folding (pure XLA glue) ----
    w1t = jnp.transpose(w1, (0, 2, 1))                                # (D, HW, HWm)
    w1t_eff = (ln_w[:, :, None] * w1t).astype(jnp.bfloat16)           # LN scale folded
    b1_eff = (b1 + jnp.einsum('dh,dhm->dm', ln_b, w1t))[:, None, :]   # (D, 1, HWm) f32
    w2t = jnp.transpose(w2, (0, 2, 1)).astype(jnp.bfloat16)           # (D, HWm, HW)
    b2_k = b2[:, None, :]                                             # (D, 1, HW)  f32
    wc_b = wc.astype(jnp.bfloat16)                                    # (OC, C)
    wr_t = wr.T.astype(jnp.bfloat16)                                  # (HW, R)
    # channel_proj bias pushed through row_proj (projection reorder).
    bias_eff = bc[:, None] * jnp.sum(wr, axis=1)[None, :] + br[None, :]  # (OC, R) f32

    # Row-stacked activations: (B*C, HW) bf16 (halves HBM->VMEM DMA bytes).
    x_rows = x.reshape(B * C, HW).astype(jnp.bfloat16)

    full = lambda shape: pl.BlockSpec(shape, lambda i: (0,) * len(shape))

    out3 = pl.pallas_call(
        functools.partial(mixvpr_kernel, mix_depth=mix_depth, bt=bt, c=C),
        out_shape=jax.ShapeDtypeStruct((B, OC, R), jnp.float32),
        grid_spec=pltpu.PrefetchScalarGridSpec(
            num_scalar_prefetch=0,
            grid=(B // bt,),
            in_specs=[
                pl.BlockSpec((bt * C, HW), lambda i: (i, 0)),   # x rows (bf16)
                full((mix_depth, HW, HWm)),                     # ln_w * w1^T (bf16)
                full((mix_depth, 1, HWm)),                      # b1_eff (f32)
                full((mix_depth, HWm, HW)),                     # w2^T (bf16)
                full((mix_depth, 1, HW)),                       # b2 (f32)
                full((OC, C)),                                  # wc (bf16)
                full((OC, R)),                                  # bias_eff (f32)
                full((HW, R)),                                  # wr^T (bf16)
            ],
            out_specs=pl.BlockSpec((bt, OC, R), lambda i: (i, 0, 0)),
        ),
        compiler_params=pltpu.CompilerParams(
            dimension_semantics=("parallel",),          # independent batch blocks
            vmem_limit_bytes=48 * 1024 * 1024,          # headroom for prod shapes
        ),
    )(x_rows, w1t_eff, b1_eff, w2t, b2_k, wc_b, bias_eff, wr_t)

    return out3.reshape(B, OC * R)


def mixvpr_reference(x, params, *, mix_depth):
    """Pure-JAX f32 mirror of the PyTorch forward (for validation)."""
    ln_w, ln_b, w1, b1, w2, b2, wc, bc, wr, br = params
    B, C, H, W = x.shape
    xf = x.reshape(B, C, H * W)
    for d in range(mix_depth):
        mean = xf.mean(-1, keepdims=True)
        var = ((xf - mean) ** 2).mean(-1, keepdims=True)
        xn = (xf - mean) / jnp.sqrt(var + 1e-5) * ln_w[d] + ln_b[d]
        h = jax.nn.relu(xn @ w1[d].T + b1[d])
        xf = xf + h @ w2[d].T + b2[d]
    y = jnp.transpose(xf, (0, 2, 1)) @ wc.T + bc          # (B, HW, OC)
    y = jnp.transpose(y, (0, 2, 1)) @ wr.T + br           # (B, OC, R)
    y = y.reshape(B, -1)
    return y / jnp.maximum(jnp.linalg.norm(y, axis=-1, keepdims=True), 1e-12)


def init_params(key, *, in_channels, hw, out_channels, out_rows,
                mix_depth, mlp_ratio):
    """Deterministic synthetic init matching the module's parameter shapes.

    LayerNorm affine is perturbed away from the (ones, zeros) default so the
    wrapper-side affine folding is actually exercised by the check.
    """
    hwm = int(hw * mlp_ratio)
    keys = jax.random.split(key, 8)
    tn = lambda k, shape: 0.02 * jax.random.truncated_normal(k, -2.0, 2.0, shape,
                                                             jnp.float32)
    ln_w = 1.0 + 0.1 * jax.random.normal(keys[6], (mix_depth, hw), jnp.float32)
    ln_b = 0.1 * jax.random.normal(keys[7], (mix_depth, hw), jnp.float32)
    w1 = tn(keys[0], (mix_depth, hwm, hw))                 # trunc_normal std=0.02
    b1 = jnp.zeros((mix_depth, hwm), jnp.float32)
    w2 = tn(keys[1], (mix_depth, hw, hwm))
    b2 = jnp.zeros((mix_depth, hw), jnp.float32)
    # channel_proj / row_proj: default nn.Linear init (uniform +/- 1/sqrt(fan_in)).
    lim_c = 1.0 / jnp.sqrt(in_channels)
    wc = jax.random.uniform(keys[2], (out_channels, in_channels), jnp.float32,
                            -lim_c, lim_c)
    bc = jax.random.uniform(keys[3], (out_channels,), jnp.float32, -lim_c, lim_c)
    lim_r = 1.0 / jnp.sqrt(hw)
    wr = jax.random.uniform(keys[4], (out_rows, hw), jnp.float32, -lim_r, lim_r)
    br = jax.random.uniform(keys[5], (out_rows,), jnp.float32, -lim_r, lim_r)
    return (ln_w, ln_b, w1, b1, w2, b2, wc, bc, wr, br)


if __name__ == "__main__":
    # Small MixVPR config: in_channels=32, in_h=in_w=4, out_channels=32,
    # mix_depth=2, mlp_ratio=1, out_rows=4.
    B, C, H, W = 2, 32, 4, 4
    OUT_C, OUT_ROWS, MIX_DEPTH, MLP_RATIO = 32, 4, 2, 1
    HW = H * W

    key = jax.random.PRNGKey(0)
    kx, kp = jax.random.split(key)
    x = jax.random.normal(kx, (B, C, H, W), jnp.float32)
    params = init_params(kp, in_channels=C, hw=HW, out_channels=OUT_C,
                         out_rows=OUT_ROWS, mix_depth=MIX_DEPTH,
                         mlp_ratio=MLP_RATIO)

    out = mixvpr_forward(x, params, mix_depth=MIX_DEPTH)
    out = jax.block_until_ready(out)

    ref = mixvpr_reference(x, params, mix_depth=MIX_DEPTH)
    assert out.shape == (B, OUT_C * OUT_ROWS), out.shape
    # bf16 weights/activations on the MXU -> loosened tolerance vs f32 reference.
    assert jnp.allclose(out, ref, atol=1e-2, rtol=1e-2), \
        float(jnp.max(jnp.abs(out - ref)))

    print("KERNEL_OK")
</pallas_src>

<mosaic_0001>
module attributes {stable_mosaic.version = 11 : i64} {
  func.func @mixvpr_kernel(%arg0: i32, %arg1: memref<64x16xbf16, #tpu.memory_space<vmem>>, %arg2: memref<2x16x16xbf16, #tpu.memory_space<vmem>>, %arg3: memref<2x1x16xf32, #tpu.memory_space<vmem>>, %arg4: memref<2x16x16xbf16, #tpu.memory_space<vmem>>, %arg5: memref<2x1x16xf32, #tpu.memory_space<vmem>>, %arg6: memref<32x32xbf16, #tpu.memory_space<vmem>>, %arg7: memref<32x4xf32, #tpu.memory_space<vmem>>, %arg8: memref<16x4xbf16, #tpu.memory_space<vmem>>, %arg9: memref<2x32x4xf32, #tpu.memory_space<vmem>>) attributes {dimension_semantics = [#tpu.dimension_semantics<parallel>], iteration_bounds = array<i64: 1>, scalar_prefetch = 0 : i64, scratch_operands = 0 : i64, tpu.core_type = #tpu.core_type<tc>, window_params = [{transform_indices = @transform_0, window_bounds = array<i64: 64, 16>}, {pipeline_mode = #tpu.pipeline_mode<synchronous>, transform_indices = @transform_1, window_bounds = array<i64: 2, 16, 16>}, {pipeline_mode = #tpu.pipeline_mode<synchronous>, transform_indices = @transform_2, window_bounds = array<i64: 2, 1, 16>}, {pipeline_mode = #tpu.pipeline_mode<synchronous>, transform_indices = @transform_3, window_bounds = array<i64: 2, 16, 16>}, {pipeline_mode = #tpu.pipeline_mode<synchronous>, transform_indices = @transform_4, window_bounds = array<i64: 2, 1, 16>}, {pipeline_mode = #tpu.pipeline_mode<synchronous>, transform_indices = @transform_5, window_bounds = array<i64: 32, 32>}, {pipeline_mode = #tpu.pipeline_mode<synchronous>, transform_indices = @transform_6, window_bounds = array<i64: 32, 4>}, {pipeline_mode = #tpu.pipeline_mode<synchronous>, transform_indices = @transform_7, window_bounds = array<i64: 16, 4>}, {transform_indices = @transform_8, window_bounds = array<i64: 2, 32, 4>}]} {
    %c0 = arith.constant 0 : index
    %c0_0 = arith.constant 0 : index
    %0 = vector.load %arg1[%c0, %c0_0] : memref<64x16xbf16, #tpu.memory_space<vmem>>, vector<64x16xbf16>
    %1 = arith.extf %0 : vector<64x16xbf16> to vector<64x16xf32>
    %cst = arith.constant dense<0.000000e+00> : vector<64xf32>
    %2 = vector.multi_reduction <add>, %1, %cst [1] : vector<64x16xf32> to vector<64xf32>
    %3 = vector.shape_cast %2 : vector<64xf32> to vector<64x1xf32>
    %cst_1 = arith.constant 6.250000e-02 : f32
    %4 = vector.broadcast %cst_1 : f32 to vector<64x1xf32>
    %5 = arith.mulf %3, %4 : vector<64x1xf32>
    %6 = arith.mulf %1, %1 : vector<64x16xf32>
    %cst_2 = arith.constant dense<0.000000e+00> : vector<64xf32>
    %7 = vector.multi_reduction <add>, %6, %cst_2 [1] : vector<64x16xf32> to vector<64xf32>
    %8 = vector.shape_cast %7 : vector<64xf32> to vector<64x1xf32>
    %cst_3 = arith.constant 6.250000e-02 : f32
    %9 = vector.broadcast %cst_3 : f32 to vector<64x1xf32>
    %10 = arith.mulf %8, %9 : vector<64x1xf32>
    %11 = arith.mulf %5, %5 : vector<64x1xf32>
    %12 = arith.subf %10, %11 : vector<64x1xf32>
    %cst_4 = arith.constant 0.000000e+00 : f32
    %13 = vector.broadcast %cst_4 : f32 to vector<64x1xf32>
    %14 = arith.maximumf %12, %13 : vector<64x1xf32>
    %15 = vector.broadcast %5 : vector<64x1xf32> to vector<64x16xf32>
    %16 = arith.subf %1, %15 : vector<64x16xf32>
    %cst_5 = arith.constant 9.99999974E-6 : f32
    %17 = vector.broadcast %cst_5 : f32 to vector<64x1xf32>
    %18 = arith.addf %14, %17 : vector<64x1xf32>
    %19 = math.rsqrt %18 : vector<64x1xf32>
    %20 = vector.broadcast %19 : vector<64x1xf32> to vector<64x16xf32>
    %21 = arith.mulf %16, %20 : vector<64x16xf32>
    %22 = arith.truncf %21 : vector<64x16xf32> to vector<64x16xbf16>
    %c0_6 = arith.constant 0 : index
    %c0_7 = arith.constant 0 : index
    %c0_8 = arith.constant 0 : index
    %23 = vector.load %arg2[%c0_6, %c0_7, %c0_8] : memref<2x16x16xbf16, #tpu.memory_space<vmem>>, vector<1x16x16xbf16>
    %24 = vector.shape_cast %23 : vector<1x16x16xbf16> to vector<16x16xbf16>
    %cst_9 = arith.constant dense<0.000000e+00> : vector<64x16xf32>
    %25 = tpu.matmul %22, %24, %cst_9 {dimension_numbers = #tpu.dot_dimension_numbers<[1], [0], [0], [1], [0, 0, 1, 1], [], []>} : vector<64x16xbf16>, vector<16x16xbf16>, vector<64x16xf32> -> vector<64x16xf32>
    %c0_10 = arith.constant 0 : index
    %c0_11 = arith.constant 0 : index
    %c0_12 = arith.constant 0 : index
    %26 = vector.load %arg3[%c0_10, %c0_11, %c0_12] : memref<2x1x16xf32, #tpu.memory_space<vmem>>, vector<1x1x16xf32>
    %27 = vector.shape_cast %26 : vector<1x1x16xf32> to vector<1x16xf32>
    %28 = vector.broadcast %27 : vector<1x16xf32> to vector<64x16xf32>
    %29 = arith.addf %25, %28 : vector<64x16xf32>
    %cst_13 = arith.constant 0.000000e+00 : f32
    %30 = vector.broadcast %cst_13 : f32 to vector<64x16xf32>
    %31 = arith.maximumf %29, %30 : vector<64x16xf32>
    %32 = arith.truncf %31 : vector<64x16xf32> to vector<64x16xbf16>
    %c0_14 = arith.constant 0 : index
    %c0_15 = arith.constant 0 : index
    %c0_16 = arith.constant 0 : index
    %33 = vector.load %arg4[%c0_14, %c0_15, %c0_16] : memref<2x16x16xbf16, #tpu.memory_space<vmem>>, vector<1x16x16xbf16>
    %34 = vector.shape_cast %33 : vector<1x16x16xbf16> to vector<16x16xbf16>
    %cst_17 = arith.constant dense<0.000000e+00> : vector<64x16xf32>
    %35 = tpu.matmul %32, %34, %cst_17 {dimension_numbers = #tpu.dot_dimension_numbers<[1], [0], [0], [1], [0, 0, 1, 1], [], []>} : vector<64x16xbf16>, vector<16x16xbf16>, vector<64x16xf32> -> vector<64x16xf32>
    %c0_18 = arith.constant 0 : index
    %c0_19 = arith.constant 0 : index
    %c0_20 = arith.constant 0 : index
    %36 = vector.load %arg5[%c0_18, %c0_19, %c0_20] : memref<2x1x16xf32, #tpu.memory_space<vmem>>, vector<1x1x16xf32>
    %37 = vector.shape_cast %36 : vector<1x1x16xf32> to vector<1x16xf32>
    %38 = vector.broadcast %37 : vector<1x16xf32> to vector<64x16xf32>
    %39 = arith.addf %35, %38 : vector<64x16xf32>
    %40 = arith.addf %1, %39 : vector<64x16xf32>
    %cst_21 = arith.constant dense<0.000000e+00> : vector<64xf32>
    %41 = vector.multi_reduction <add>, %40, %cst_21 [1] : vector<64x16xf32> to vector<64xf32>
    %42 = vector.shape_cast %41 : vector<64xf32> to vector<64x1xf32>
    %cst_22 = arith.constant 6.250000e-02 : f32
    %43 = vector.broadcast %cst_22 : f32 to vector<64x1xf32>
    %44 = arith.mulf %42, %43 : vector<64x1xf32>
    %45 = arith.mulf %40, %40 : vector<64x16xf32>
    %cst_23 = arith.constant dense<0.000000e+00> : vector<64xf32>
    %46 = vector.multi_reduction <add>, %45, %cst_23 [1] : vector<64x16xf32> to vector<64xf32>
    %47 = vector.shape_cast %46 : vector<64xf32> to vector<64x1xf32>
    %cst_24 = arith.constant 6.250000e-02 : f32
    %48 = vector.broadcast %cst_24 : f32 to vector<64x1xf32>
    %49 = arith.mulf %47, %48 : vector<64x1xf32>
    %50 = arith.mulf %44, %44 : vector<64x1xf32>
    %51 = arith.subf %49, %50 : vector<64x1xf32>
    %cst_25 = arith.constant 0.000000e+00 : f32
    %52 = vector.broadcast %cst_25 : f32 to vector<64x1xf32>
    %53 = arith.maximumf %51, %52 : vector<64x1xf32>
    %54 = vector.broadcast %44 : vector<64x1xf32> to vector<64x16xf32>
    %55 = arith.subf %40, %54 : vector<64x16xf32>
    %cst_26 = arith.constant 9.99999974E-6 : f32
    %56 = vector.broadcast %cst_26 : f32 to vector<64x1xf32>
    %57 = arith.addf %53, %56 : vector<64x1xf32>
    %58 = math.rsqrt %57 : vector<64x1xf32>
    %59 = vector.broadcast %58 : vector<64x1xf32> to vector<64x16xf32>
    %60 = arith.mulf %55, %59 : vector<64x16xf32>
    %61 = arith.truncf %60 : vector<64x16xf32> to vector<64x16xbf16>
    %c1 = arith.constant 1 : index
    %c0_27 = arith.constant 0 : index
    %c0_28 = arith.constant 0 : index
    %62 = vector.load %arg2[%c1, %c0_27, %c0_28] : memref<2x16x16xbf16, #tpu.memory_space<vmem>>, vector<1x16x16xbf16>
    %63 = vector.shape_cast %62 : vector<1x16x16xbf16> to vector<16x16xbf16>
    %cst_29 = arith.constant dense<0.000000e+00> : vector<64x16xf32>
    %64 = tpu.matmul %61, %63, %cst_29 {dimension_numbers = #tpu.dot_dimension_numbers<[1], [0], [0], [1], [0, 0, 1, 1], [], []>} : vector<64x16xbf16>, vector<16x16xbf16>, vector<64x16xf32> -> vector<64x16xf32>
    %c1_30 = arith.constant 1 : index
    %c0_31 = arith.constant 0 : index
    %c0_32 = arith.constant 0 : index
    %65 = vector.load %arg3[%c1_30, %c0_31, %c0_32] : memref<2x1x16xf32, #tpu.memory_space<vmem>>, vector<1x1x16xf32>
    %66 = vector.shape_cast %65 : vector<1x1x16xf32> to vector<1x16xf32>
    %67 = vector.broadcast %66 : vector<1x16xf32> to vector<64x16xf32>
    %68 = arith.addf %64, %67 : vector<64x16xf32>
    %cst_33 = arith.constant 0.000000e+00 : f32
    %69 = vector.broadcast %cst_33 : f32 to vector<64x16xf32>
    %70 = arith.maximumf %68, %69 : vector<64x16xf32>
    %71 = arith.truncf %70 : vector<64x16xf32> to vector<64x16xbf16>
    %c1_34 = arith.constant 1 : index
    %c0_35 = arith.constant 0 : index
    %c0_36 = arith.constant 0 : index
    %72 = vector.load %arg4[%c1_34, %c0_35, %c0_36] : memref<2x16x16xbf16, #tpu.memory_space<vmem>>, vector<1x16x16xbf16>
    %73 = vector.shape_cast %72 : vector<1x16x16xbf16> to vector<16x16xbf16>
    %cst_37 = arith.constant dense<0.000000e+00> : vector<64x16xf32>
    %74 = tpu.matmul %71, %73, %cst_37 {dimension_numbers = #tpu.dot_dimension_numbers<[1], [0], [0], [1], [0, 0, 1, 1], [], []>} : vector<64x16xbf16>, vector<16x16xbf16>, vector<64x16xf32> -> vector<64x16xf32>
    %c1_38 = arith.constant 1 : index
    %c0_39 = arith.constant 0 : index
    %c0_40 = arith.constant 0 : index
    %75 = vector.load %arg5[%c1_38, %c0_39, %c0_40] : memref<2x1x16xf32, #tpu.memory_space<vmem>>, vector<1x1x16xf32>
    %76 = vector.shape_cast %75 : vector<1x1x16xf32> to vector<1x16xf32>
    %77 = vector.broadcast %76 : vector<1x16xf32> to vector<64x16xf32>
    %78 = arith.addf %74, %77 : vector<64x16xf32>
    %79 = arith.addf %40, %78 : vector<64x16xf32>
    %80 = arith.truncf %79 : vector<64x16xf32> to vector<64x16xbf16>
    %c0_41 = arith.constant 0 : index
    %c0_42 = arith.constant 0 : index
    %81 = vector.load %arg8[%c0_41, %c0_42] : memref<16x4xbf16, #tpu.memory_space<vmem>>, vector<16x4xbf16>
    %cst_43 = arith.constant dense<0.000000e+00> : vector<64x4xf32>
    %82 = tpu.matmul %80, %81, %cst_43 {dimension_numbers = #tpu.dot_dimension_numbers<[1], [0], [0], [1], [0, 0, 1, 1], [], []>} : vector<64x16xbf16>, vector<16x4xbf16>, vector<64x4xf32> -> vector<64x4xf32>
    %83 = vector.extract_strided_slice %82 {offsets = [0, 0], sizes = [32, 4], strides = [1, 1]} : vector<64x4xf32> to vector<32x4xf32>
    %84 = arith.truncf %83 : vector<32x4xf32> to vector<32x4xbf16>
    %c0_44 = arith.constant 0 : index
    %c0_45 = arith.constant 0 : index
    %85 = vector.load %arg6[%c0_44, %c0_45] : memref<32x32xbf16, #tpu.memory_space<vmem>>, vector<32x32xbf16>
    %cst_46 = arith.constant dense<0.000000e+00> : vector<32x4xf32>
    %86 = tpu.matmul %85, %84, %cst_46 {dimension_numbers = #tpu.dot_dimension_numbers<[1], [0], [0], [1], [0, 0, 1, 1], [], []>} : vector<32x32xbf16>, vector<32x4xbf16>, vector<32x4xf32> -> vector<32x4xf32>
    %c0_47 = arith.constant 0 : index
    %c0_48 = arith.constant 0 : index
    %87 = vector.load %arg7[%c0_47, %c0_48] : memref<32x4xf32, #tpu.memory_space<vmem>>, vector<32x4xf32>
    %88 = arith.addf %86, %87 : vector<32x4xf32>
    %89 = arith.mulf %88, %88 : vector<32x4xf32>
    %90 = vector.shape_cast %89 : vector<32x4xf32> to vector<1x32x4xf32>
    %cst_49 = arith.constant dense<0.000000e+00> : vector<1xf32>
    %91 = vector.multi_reduction <add>, %90, %cst_49 [1, 2] : vector<1x32x4xf32> to vector<1xf32>
    %92 = vector.shape_cast %91 : vector<1xf32> to vector<1x1x1xf32>
    %93 = vector.extract %92[0, 0, 0] : f32 from vector<1x1x1xf32>
    %94 = vector.broadcast %93 : f32 to vector<1x1xf32>
    %cst_50 = arith.constant 1.000000e-24 : f32
    %95 = vector.broadcast %cst_50 : f32 to vector<1x1xf32>
    %96 = arith.maximumf %94, %95 : vector<1x1xf32>
    %97 = math.rsqrt %96 : vector<1x1xf32>
    %98 = vector.broadcast %97 : vector<1x1xf32> to vector<32x4xf32>
    %99 = arith.mulf %88, %98 : vector<32x4xf32>
    %c0_51 = arith.constant 0 : index
    %c0_52 = arith.constant 0 : index
    %c0_53 = arith.constant 0 : index
    %100 = vector.load %arg9[%c0_51, %c0_52, %c0_53] : memref<2x32x4xf32, #tpu.memory_space<vmem>>, vector<1x32x4xf32>
    %101 = vector.shape_cast %100 : vector<1x32x4xf32> to vector<32x4xf32>
    %102 = vector.shape_cast %99 : vector<32x4xf32> to vector<1x32x4xf32>
    tpu.vector_store %arg9[%c0_51, %c0_52, %c0_53], %102 {strides = array<i32>} : memref<2x32x4xf32, #tpu.memory_space<vmem>>, vector<1x32x4xf32>,
    %103 = vector.extract_strided_slice %82 {offsets = [32, 0], sizes = [32, 4], strides = [1, 1]} : vector<64x4xf32> to vector<32x4xf32>
    %104 = arith.truncf %103 : vector<32x4xf32> to vector<32x4xbf16>
    %c0_54 = arith.constant 0 : index
    %c0_55 = arith.constant 0 : index
    %105 = vector.load %arg6[%c0_54, %c0_55] : memref<32x32xbf16, #tpu.memory_space<vmem>>, vector<32x32xbf16>
    %cst_56 = arith.constant dense<0.000000e+00> : vector<32x4xf32>
    %106 = tpu.matmul %105, %104, %cst_56 {dimension_numbers = #tpu.dot_dimension_numbers<[1], [0], [0], [1], [0, 0, 1, 1], [], []>} : vector<32x32xbf16>, vector<32x4xbf16>, vector<32x4xf32> -> vector<32x4xf32>
    %c0_57 = arith.constant 0 : index
    %c0_58 = arith.constant 0 : index
    %107 = vector.load %arg7[%c0_57, %c0_58] : memref<32x4xf32, #tpu.memory_space<vmem>>, vector<32x4xf32>
    %108 = arith.addf %106, %107 : vector<32x4xf32>
    %109 = arith.mulf %108, %108 : vector<32x4xf32>
    %110 = vector.shape_cast %109 : vector<32x4xf32> to vector<1x32x4xf32>
    %cst_59 = arith.constant dense<0.000000e+00> : vector<1xf32>
    %111 = vector.multi_reduction <add>, %110, %cst_59 [1, 2] : vector<1x32x4xf32> to vector<1xf32>
    %112 = vector.shape_cast %111 : vector<1xf32> to vector<1x1x1xf32>
    %113 = vector.extract %112[0, 0, 0] : f32 from vector<1x1x1xf32>
    %114 = vector.broadcast %113 : f32 to vector<1x1xf32>
    %cst_60 = arith.constant 1.000000e-24 : f32
    %115 = vector.broadcast %cst_60 : f32 to vector<1x1xf32>
    %116 = arith.maximumf %114, %115 : vector<1x1xf32>
    %117 = math.rsqrt %116 : vector<1x1xf32>
    %118 = vector.broadcast %117 : vector<1x1xf32> to vector<32x4xf32>
    %119 = arith.mulf %108, %118 : vector<32x4xf32>
    %c1_61 = arith.constant 1 : index
    %c0_62 = arith.constant 0 : index
    %c0_63 = arith.constant 0 : index
    %120 = vector.load %arg9[%c1_61, %c0_62, %c0_63] : memref<2x32x4xf32, #tpu.memory_space<vmem>>, vector<1x32x4xf32>
    %121 = vector.shape_cast %120 : vector<1x32x4xf32> to vector<32x4xf32>
    %122 = vector.shape_cast %119 : vector<32x4xf32> to vector<1x32x4xf32>
    tpu.vector_store %arg9[%c1_61, %c0_62, %c0_63], %122 {strides = array<i32>} : memref<2x32x4xf32, #tpu.memory_space<vmem>>, vector<1x32x4xf32>,
    return
  }
  func.func @transform_0(%arg0: i32) -> (i32, i32) {
    %c0_i32 = arith.constant 0 : i32
    %c0_i32_0 = arith.constant 0 : i32
    return %arg0, %c0_i32 : i32, i32
  }
  func.func @transform_1(%arg0: i32) -> (i32, i32, i32) {
    %c0_i32 = arith.constant 0 : i32
    %c0_i32_0 = arith.constant 0 : i32
    %c0_i32_1 = arith.constant 0 : i32
    %c0_i32_2 = arith.constant 0 : i32
    return %c0_i32, %c0_i32_0, %c0_i32_1 : i32, i32, i32
  }
  func.func @transform_2(%arg0: i32) -> (i32, i32, i32) {
    %c0_i32 = arith.constant 0 : i32
    %c0_i32_0 = arith.constant 0 : i32
    %c0_i32_1 = arith.constant 0 : i32
    %c0_i32_2 = arith.constant 0 : i32
    return %c0_i32, %c0_i32_0, %c0_i32_1 : i32, i32, i32
  }
  func.func @transform_3(%arg0: i32) -> (i32, i32, i32) {
    %c0_i32 = arith.constant 0 : i32
    %c0_i32_0 = arith.constant 0 : i32
    %c0_i32_1 = arith.constant 0 : i32
    %c0_i32_2 = arith.constant 0 : i32
    return %c0_i32, %c0_i32_0, %c0_i32_1 : i32, i32, i32
  }
  func.func @transform_4(%arg0: i32) -> (i32, i32, i32) {
    %c0_i32 = arith.constant 0 : i32
    %c0_i32_0 = arith.constant 0 : i32
    %c0_i32_1 = arith.constant 0 : i32
    %c0_i32_2 = arith.constant 0 : i32
    return %c0_i32, %c0_i32_0, %c0_i32_1 : i32, i32, i32
  }
  func.func @transform_5(%arg0: i32) -> (i32, i32) {
    %c0_i32 = arith.constant 0 : i32
    %c0_i32_0 = arith.constant 0 : i32
    %c0_i32_1 = arith.constant 0 : i32
    return %c0_i32, %c0_i32_0 : i32, i32
  }
  func.func @transform_6(%arg0: i32) -> (i32, i32) {
    %c0_i32 = arith.constant 0 : i32
    %c0_i32_0 = arith.constant 0 : i32
    %c0_i32_1 = arith.constant 0 : i32
    return %c0_i32, %c0_i32_0 : i32, i32
  }
  func.func @transform_7(%arg0: i32) -> (i32, i32) {
    %c0_i32 = arith.constant 0 : i32
    %c0_i32_0 = arith.constant 0 : i32
    %c0_i32_1 = arith.constant 0 : i32
    return %c0_i32, %c0_i32_0 : i32, i32
  }
  func.func @transform_8(%arg0: i32) -> (i32, i32, i32) {
    %c0_i32 = arith.constant 0 : i32
    %c0_i32_0 = arith.constant 0 : i32
    %c0_i32_1 = arith.constant 0 : i32
    return %arg0, %c0_i32, %c0_i32_0 : i32, i32, i32
  }
}

</mosaic_0001>

<bundles_post_ra>
// kernel: tpu_custom_call.1
= control target key start
LH: loop header
LB: loop body
LE: loop exit
PB: predicated region body
PF: predicated region fallthrough
CT: control target
= control target key end

     0   :  { %vm46_vm0 = vcmask 130048   ;;  %vm832_vm1 = vcmask 261120   ;;  %vm892_vm2 = vcmask 31744   ;;  %s1601_s0 = inlined_call_operand.vmem [shape: bf16[64,16], index: 0, kind: input, shape index: {}]   ;;  %s1602_s1 = inlined_call_operand.vmem [shape: bf16[2,16,16], index: 1, kind: input, shape index: {}]   ;;  %s1603_s3 = inlined_call_operand.vmem [shape: bf16[2,16,16], index: 3, kind: input, shape index: {}]   ;;  %s1604_s2 = inlined_call_operand.vmem [shape: f32[2,1,16], index: 2, kind: input, shape index: {}]   ;;  %s1605_s4 = inlined_call_operand.vmem [shape: f32[2,1,16], index: 4, kind: input, shape index: {}]   ;;  %s1606_s7 = inlined_call_operand.vmem [shape: bf16[16,4], index: 7, kind: input, shape index: {}]   ;;  %s1607_s5 = inlined_call_operand.vmem [shape: bf16[32,32], index: 5, kind: input, shape index: {}]   ;;  %s1608_s6 = inlined_call_operand.vmem [shape: f32[32,4], index: 6, kind: input, shape index: {}]   ;;  %s1609_s8 = inlined_call_operand.vmem [shape: f32[2,32,4], index: 8, kind: output, shape index: {}]  }
   0x1   :  { %v1094_v0 = vld [vmem:[%s1601_s0 + $0x8] sm:$0xff]   ;;  %v1079_v1 = vld [vmem:[%s1601_s0] sm:$0xff]   ;;  %v1095_v16 = vld [vmem:[%s1601_s0 + $0x10] sm:$0xff]  }
   0x2   :  { %v1296_v2 = vunpack.c.l.bf16 %v1094_v0  ;;  %v1298_v3 = vunpack.c.l.bf16 %v1079_v1  ;;  %v1300_v4 = vunpack.c.h.bf16 %v1094_v0  ;;  %v1302_v5 = vunpack.c.h.bf16 %v1079_v1  ;;  %v1096_v21 = vld [vmem:[%s1601_s0 + $0x18] sm:$0xff]   ;;  %v1200_v36 = vld [vmem:[%s1602_s1] sm:$0xff]  }
   0x3   :  { %v1327_v19 = vunpack.c.h.bf16 %v1095_v16  ;;  %v1329_v20 = vunpack.c.l.bf16 %v1095_v16  ;;  %v1338_v24 = vunpack.c.h.bf16 %v1096_v21  ;;  %v1340_v25 = vunpack.c.l.bf16 %v1096_v21  ;;  %1130 = vmatprep.subr.bf16.mxu0 %v1200_v36 }
   0x4   :  { %v53_v6 = vsel %vm46_vm0, %v1296_v2, 0.0  ;;  %v47_v7 = vsel %vm46_vm0, %v1298_v3, 0.0  ;;  %v56_v8 = vsel %vm46_vm0, %v1300_v4, 0.0  ;;  %v50_v9 = vsel %vm46_vm0, %v1302_v5, 0.0  ;;  %1131 = vmatpush3.bf16.msra.mxu0 %v1200_v36 }
   0x5   :  { %54 = vadd.xlane.f32.xlu1 %v53_v6  ;;  %48 = vadd.xlane.f32.xlu0 %v47_v7  ;;  %v80_v10 = vmul.f32 %v1302_v5, %v1302_v5  ;;  %v79_v11 = vmul.f32 %v1298_v3, %v1298_v3  ;;  %v82_v14 = vmul.f32 %v1300_v4, %v1300_v4  ;;  %v62_v22 = vsel %vm46_vm0, %v1327_v19, 0.0 }
   0x6   :  { %v81_v15 = vmul.f32 %v1296_v2, %v1296_v2  ;;  %v59_v23 = vsel %vm46_vm0, %v1329_v20, 0.0  ;;  %v68_v26 = vsel %vm46_vm0, %v1338_v24, 0.0  ;;  %v65_v27 = vsel %vm46_vm0, %v1340_v25, 0.0 }
   0x7   :  { %v90_v12 = vsel %vm46_vm0, %v80_v10, 0.0  ;;  %v87_v13 = vsel %vm46_vm0, %v79_v11, 0.0  ;;  %v96_v17 = vsel %vm46_vm0, %v82_v14, 0.0  ;;  %v84_v28 = vmul.f32 %v1327_v19, %v1327_v19 }
   0x8   :  { %v93_v18 = vsel %vm46_vm0, %v81_v15, 0.0  ;;  %v83_v29 = vmul.f32 %v1329_v20, %v1329_v20  ;;  %v86_v32 = vmul.f32 %v1338_v24, %v1338_v24  ;;  %v85_v33 = vmul.f32 %v1340_v25, %v1340_v25 }
   0x9   :  { %57 = vadd.xlane.f32.xlu1 %v56_v8  ;;  %51 = vadd.xlane.f32.xlu0 %v50_v9  ;;  %v102_v30 = vsel %vm46_vm0, %v84_v28, 0.0 }
   0xa   :  { %v99_v31 = vsel %vm46_vm0, %v83_v29, 0.0  ;;  %v108_v34 = vsel %vm46_vm0, %v86_v32, 0.0  ;;  %v105_v35 = vsel %vm46_vm0, %v85_v33, 0.0 }
   0xd   :  { %91 = vadd.xlane.f32.xlu1 %v90_v12  ;;  %88 = vadd.xlane.f32.xlu0 %v87_v13 }
  0x11   :  { %97 = vadd.xlane.f32.xlu1 %v96_v17  ;;  %94 = vadd.xlane.f32.xlu0 %v93_v18 }
  0x15   :  { %63 = vadd.xlane.f32.xlu1 %v62_v22  ;;  %60 = vadd.xlane.f32.xlu0 %v59_v23 }
  0x19   :  { %69 = vadd.xlane.f32.xlu1 %v68_v26  ;;  %66 = vadd.xlane.f32.xlu0 %v65_v27 }
  0x1d   :  { %103 = vadd.xlane.f32.xlu1 %v102_v30  ;;  %100 = vadd.xlane.f32.xlu0 %v99_v31 }
  0x21   :  { %109 = vadd.xlane.f32.xlu1 %v108_v34  ;;  %106 = vadd.xlane.f32.xlu0 %v105_v35 }
  0x92   :  { %v55_v37 = vpop.xlane.xlu1 %54  ;;  %v49_v38 = vpop.xlane.xlu0 %48 }
  0x93   :  { %v1361_v41 = vmul.f32 0.0625, %v49_v38  ;;  %v1363_v43 = vmul.f32 0.0625, %v55_v37 }
  0x95   :  { %v119_v47 = vmul.f32 %v1361_v41, %v1361_v41  ;;  %v121_v53 = vmul.f32 %v1363_v43, %v1363_v43  ;;  %v143_v32 = vsub.f32 %v1298_v3, %v1361_v41 }
  0x96   :  { %v58_v39 = vpop.xlane.xlu1 %57  ;;  %v52_v40 = vpop.xlane.xlu0 %51 }
  0x97   :  { %v72_v42 = vmul.f32 0.0625, %v52_v40  ;;  %v1365_v44 = vmul.f32 0.0625, %v58_v39 }
  0x99   :  { %v120_v48 = vmul.f32 %v72_v42, %v72_v42  ;;  %v122_v54 = vmul.f32 %v1365_v44, %v1365_v44  ;;  %v144_v27 = vsub.f32 %v1302_v5, %v72_v42  ;;  %v146_v42 = vsub.f32 %v1300_v4, %v1365_v44 }
  0x9a   :  { %v92_v45 = vpop.xlane.xlu1 %91  ;;  %v89_v46 = vpop.xlane.xlu0 %88 }
  0x9b   :  { %v112_v49 = vmul.f32 0.0625, %v92_v45  ;;  %v111_v50 = vmul.f32 0.0625, %v89_v46  ;;  %v145_v46 = vsub.f32 %v1296_v2, %v1363_v43 }
  0x9d   :  { %v128_v51 = vsub.f32 %v112_v49, %v120_v48  ;;  %v127_v52 = vsub.f32 %v111_v50, %v119_v47 }
  0x9e   :  { %v98_v55 = vpop.xlane.xlu1 %97  ;;  %v95_v56 = vpop.xlane.xlu0 %94 }
  0x9f   :  { %v136_v57 = vmax.f32 %v128_v51, 0.0  ;;  %v135_v58 = vmax.f32 %v127_v52, 0.0  ;;  %v114_v59 = vmul.f32 0.0625, %v98_v55  ;;  %v113_v60 = vmul.f32 0.0625, %v95_v56 }
  0xa1   :  { %v152_v61 = vadd.f32 1e-05, %v136_v57  ;;  %v151_v62 = vadd.f32 1e-05, %v135_v58  ;;  %v130_v63 = vsub.f32 %v114_v59, %v122_v54  ;;  %v129_v0 = vsub.f32 %v113_v60, %v121_v53 }
  0xa2   :  { %v64_v1 = vpop.xlane.xlu1 %63  ;;  %v61_v6 = vpop.xlane.xlu0 %60 }
  0xa3   :  { %1209 = vrsqrt.f32 %v152_v61  ;;  %v138_v7 = vmax.f32 %v130_v63, 0.0  ;;  %v137_v8 = vmax.f32 %v129_v0, 0.0  ;;  %v76_v13 = vmul.f32 0.0625, %v64_v1 }
  0xa4   :  { %1211 = vrsqrt.f32 %v151_v62  ;;  %v75_v14 = vmul.f32 0.0625, %v61_v6 }
  0xa5   :  { %v154_v9 = vadd.f32 1e-05, %v138_v7  ;;  %v153_v10 = vadd.f32 1e-05, %v137_v8  ;;  %v124_v21 = vmul.f32 %v76_v13, %v76_v13  ;;  %v148_v44 = vsub.f32 %v1327_v19, %v76_v13  ;;  %v1201_v13 = vld [vmem:[%s1603_s3] sm:$0xff]  }
  0xa6   :  { %v70_v11 = vpop.xlane.xlu1 %69  ;;  %v67_v12 = vpop.xlane.xlu0 %66  ;;  %v123_v22 = vmul.f32 %v75_v14, %v75_v14  ;;  %v147_v61 = vsub.f32 %v1329_v20, %v75_v14  ;;  %1140 = vmatprep.subr.bf16.mxu1 %v1201_v13  ;;  %v1031_v14 = vld [vmem:[%s1604_s2] ss:$0 sm:$0xff] }
  0xa7   :  { %1213 = vrsqrt.f32 %v154_v9  ;;  %v78_v15 = vmul.f32 0.0625, %v70_v11  ;;  %v77_v16 = vmul.f32 0.0625, %v67_v12  ;;  %1141 = vmatpush3.bf16.msra.mxu1 %v1201_v13 }
  0xa8   :  { %1215 = vrsqrt.f32 %v153_v10 }
  0xa9   :  { %v126_v33 = vmul.f32 %v78_v15, %v78_v15  ;;  %v125_v34 = vmul.f32 %v77_v16, %v77_v16  ;;  %v150_v1 = vsub.f32 %v1338_v24, %v78_v15  ;;  %v149_v7 = vsub.f32 %v1340_v25, %v77_v16 }
  0xaa   :  { %v104_v17 = vpop.xlane.xlu1 %103  ;;  %v101_v18 = vpop.xlane.xlu0 %100 }
  0xab   :  { %v116_v23 = vmul.f32 0.0625, %v104_v17  ;;  %v115_v26 = vmul.f32 0.0625, %v101_v18 }
  0xad   :  { %v1210_v28 = vpop.eup %1209  ;;  %v132_v29 = vsub.f32 %v116_v23, %v124_v21  ;;  %v131_v30 = vsub.f32 %v115_v26, %v123_v22 }
  0xae   :  { %v1212_v31 = vpop.eup %1211  ;;  %v110_v35 = vpop.xlane.xlu1 %109  ;;  %v168_v37 = vmul.f32 %v1210_v28, %v144_v27 }
  0xaf   :  { %v107_v36 = vpop.xlane.xlu0 %106  ;;  %v140_v38 = vmax.f32 %v132_v29, 0.0  ;;  %v139_v39 = vmax.f32 %v131_v30, 0.0  ;;  %v118_v40 = vmul.f32 0.0625, %v110_v35  ;;  %v167_v47 = vmul.f32 %v1212_v31, %v143_v32 }
  0xb0   :  { %v117_v45 = vmul.f32 0.0625, %v107_v36 }
  0xb1   :  { %v1214_v48 = vpop.eup %1213  ;;  %v156_v49 = vadd.f32 1e-05, %v140_v38  ;;  %v155_v50 = vadd.f32 1e-05, %v139_v39  ;;  %v134_v41 = vsub.f32 %v118_v40, %v126_v33  ;;  %v175_v53 = vpack.c.bf16 %v168_v37, %v167_v47 }
  0xb2   :  { %v133_v51 = vsub.f32 %v117_v45, %v125_v34  ;;  %v1216_v52 = vpop.eup %1215  ;;  %v170_v54 = vmul.f32 %v1214_v48, %v146_v42 }
  0xb3   :  { %1217 = vrsqrt.f32 %v156_v49  ;;  %v142_v55 = vmax.f32 %v134_v41, 0.0  ;;  %v169_v57 = vmul.f32 %v1216_v52, %v145_v46  ;;  %1132 = vmatprep.mubr.msk.bf16.mxu0 %vm46_vm0, %v175_v53 }
  0xb4   :  { %v141_v56 = vmax.f32 %v133_v51, 0.0  ;;  %1219 = vrsqrt.f32 %v155_v50  ;;  %v1037_v50 = vld [vmem:[%s1605_s4] ss:$0 sm:$0xff] }
  0xb5   :  { %v158_v43 = vadd.f32 1e-05, %v142_v55  ;;  %v176_v59 = vpack.c.bf16 %v170_v54, %v169_v57 }
  0xb6   :  { %v157_v58 = vadd.f32 1e-05, %v141_v56 }
  0xb7   :  { %1221 = vrsqrt.f32 %v158_v43  ;;  %1133 = vmatmul.mubr.msk.bf16.vlgmr.msra.gmra.mrb[0].mxu0 %vm46_vm0, %v176_v59 }
  0xb8   :  { %1223 = vrsqrt.f32 %v157_v58 }
  0xbd   :  { %v1218_v60 = vpop.eup %1217 }
  0xbe   :  { %v1220_v62 = vpop.eup %1219  ;;  %v172_v63 = vmul.f32 %v1218_v60, %v148_v44 }
  0xbf   :  { %v171_v0 = vmul.f32 %v1220_v62, %v147_v61 }
  0xc1   :  { %v1222_v6 = vpop.eup %1221  ;;  %v177_v8 = vpack.c.bf16 %v172_v63, %v171_v0 }
  0xc2   :  { %v1224_v9 = vpop.eup %1223  ;;  %v174_v10 = vmul.f32 %v1222_v6, %v150_v1 }
  0xc3   :  { %1136 = vmatprep.mubr.msk.bf16.mxu0 %vm46_vm0, %v177_v8  ;;  %v173_v11 = vmul.f32 %v1224_v9, %v149_v7 }
  0xc5   :  { %v178_v12 = vpack.c.bf16 %v174_v10, %v173_v11 }
  0xc7   :  { %1137 = vmatmul.mubr.msk.bf16.gmra.mrb[4].mxu0 %vm46_vm0, %v178_v12 }
 0x18a   :  { %v1134_v15 = vpop.f32.mrb[0].mxu0 }
 0x18b   :  { %v249_v16 = vadd.f32 %v1134_v15, %v1031_v14  ;;  %v240_v17 = vpop.f32.mrb[1].mxu0 }
 0x18c   :  { %v241_v18 = vadd.f32 %v1031_v14, %v240_v17  ;;  %v1135_v21 = vpop.f32.mrb[2].mxu0 }
 0x18d   :  { %v252_v22 = vadd.f32 %v1135_v21, %v1031_v14  ;;  %v243_v23 = vpop.f32.mrb[3].mxu0  ;;  %v273_v27 = vmax.f32 %v249_v16, 0.0 }
 0x18e   :  { %v244_v26 = vadd.f32 %v1031_v14, %v243_v23  ;;  %v271_v29 = vmax.f32 %v241_v18, 0.0 }
 0x18f   :  { %v274_v28 = vmax.f32 %v252_v22, 0.0 }
 0x190   :  { %v272_v30 = vmax.f32 %v244_v26, 0.0 }
 0x191   :  { %v280_v31 = vpack.c.bf16 %v274_v28, %v273_v27 }
 0x192   :  { %v279_v32 = vpack.c.bf16 %v272_v30, %v271_v29 }
 0x194   :  { %1142 = vmatprep.mubr.msk.bf16.mxu1 %vm46_vm0, %v279_v32  ;;  %v1202_v32 = vld [vmem:[%s1602_s1 + $0x8] sm:$0xff]  }
 0x195   :  { %1143 = vmatmul.mubr.msk.bf16.vlgmr.msra.gmra.mrb[0].mxu1 %vm46_vm0, %v280_v31  ;;  %1150 = vmatprep.subr.bf16.mxu0 %v1202_v32 }
 0x196   :  { %1151 = vmatpush3.bf16.msra.mxu0 %v1202_v32 }
 0x19a   :  { %v1138_v33 = vpop.f32.mrb[4].mxu0 }
 0x19b   :  { %v265_v34 = vadd.f32 %v1138_v33, %v1031_v14  ;;  %v256_v35 = vpop.f32.mrb[5].mxu0 }
 0x19c   :  { %v257_v36 = vadd.f32 %v1031_v14, %v256_v35  ;;  %v1139_v37 = vpop.f32.mrb[6].mxu0 }
 0x19d   :  { %v268_v38 = vadd.f32 %v1139_v37, %v1031_v14  ;;  %v259_v39 = vpop.f32.mrb[7].mxu0  ;;  %v277_v45 = vmax.f32 %v265_v34, 0.0 }
 0x19e   :  { %v260_v40 = vadd.f32 %v1031_v14, %v259_v39  ;;  %v275_v42 = vmax.f32 %v257_v36, 0.0 }
 0x19f   :  { %v278_v46 = vmax.f32 %v268_v38, 0.0 }
 0x1a0   :  { %v276_v47 = vmax.f32 %v260_v40, 0.0 }
 0x1a1   :  { %v282_v48 = vpack.c.bf16 %v278_v46, %v277_v45 }
 0x1a2   :  { %v281_v49 = vpack.c.bf16 %v276_v47, %v275_v42 }
 0x1a4   :  { %1146 = vmatprep.mubr.msk.bf16.mxu1 %vm46_vm0, %v281_v49 }
 0x1a5   :  { %1147 = vmatmul.mubr.msk.bf16.gmra.mrb[4].mxu1 %vm46_vm0, %v282_v48 }
 0x268   :  { %v1144_v41 = vpop.f32.mrb[0].mxu1 }
 0x269   :  { %v353_v51 = vadd.f32 %v1144_v41, %v1037_v50  ;;  %v344_v52 = vpop.f32.mrb[1].mxu1 }
 0x26a   :  { %v345_v53 = vadd.f32 %v1037_v50, %v344_v52  ;;  %v1145_v54 = vpop.f32.mrb[2].mxu1 }
 0x26b   :  { %v1402_v55 = vadd.f32 %v1296_v2, %v353_v51  ;;  %v356_v56 = vadd.f32 %v1145_v54, %v1037_v50  ;;  %v347_v57 = vpop.f32.mrb[3].mxu1 }
 0x26c   :  { %v348_v43 = vadd.f32 %v1037_v50, %v347_v57  ;;  %v1405_v58 = vadd.f32 %v1298_v3, %v345_v53 }
 0x26d   :  { %v1408_v59 = vadd.f32 %v1300_v4, %v356_v56  ;;  %v389_v44 = vsel %vm46_vm0, %v1402_v55, 0.0  ;;  %v417_v3 = vmul.f32 %v1402_v55, %v1402_v55 }
 0x26e   :  { %390 = vadd.xlane.f32.xlu0 %v389_v44  ;;  %v1413_v60 = vadd.f32 %v1302_v5, %v348_v43  ;;  %v383_v61 = vsel %vm46_vm0, %v1405_v58, 0.0  ;;  %v415_v63 = vmul.f32 %v1405_v58, %v1405_v58 }
 0x26f   :  { %v392_v2 = vsel %vm46_vm0, %v1408_v59, 0.0  ;;  %v418_v62 = vmul.f32 %v1408_v59, %v1408_v59  ;;  %v429_v5 = vsel %vm46_vm0, %v417_v3, 0.0 }
 0x270   :  { %393 = vadd.xlane.f32.xlu1 %v392_v2  ;;  %v386_v4 = vsel %vm46_vm0, %v1413_v60, 0.0  ;;  %v416_v1 = vmul.f32 %v1413_v60, %v1413_v60  ;;  %v423_v9 = vsel %vm46_vm0, %v415_v63, 0.0 }
 0x271   :  { %v432_v0 = vsel %vm46_vm0, %v418_v62, 0.0 }
 0x272   :  { %384 = vadd.xlane.f32.xlu0 %v383_v61  ;;  %v426_v15 = vsel %vm46_vm0, %v416_v1, 0.0 }
 0x274   :  { %387 = vadd.xlane.f32.xlu1 %v386_v4 }
 0x276   :  { %430 = vadd.xlane.f32.xlu0 %v429_v5 }
 0x278   :  { %433 = vadd.xlane.f32.xlu1 %v432_v0  ;;  %v1148_v6 = vpop.f32.mrb[4].mxu1 }
 0x279   :  { %v369_v7 = vadd.f32 %v1148_v6, %v1037_v50  ;;  %v360_v8 = vpop.f32.mrb[5].mxu1 }
 0x27a   :  { %v361_v10 = vadd.f32 %v1037_v50, %v360_v8  ;;  %424 = vadd.xlane.f32.xlu0 %v423_v9  ;;  %v1149_v11 = vpop.f32.mrb[6].mxu1 }
 0x27b   :  { %v1433_v12 = vadd.f32 %v1340_v25, %v369_v7  ;;  %v372_v13 = vadd.f32 %v1149_v11, %v1037_v50  ;;  %v363_v14 = vpop.f32.mrb[7].mxu1 }
 0x27c   :  { %v364_v16 = vadd.f32 %v1037_v50, %v363_v14  ;;  %427 = vadd.xlane.f32.xlu1 %v426_v15  ;;  %v1437_v17 = vadd.f32 %v1329_v20, %v361_v10 }
 0x27d   :  { %v1440_v18 = vadd.f32 %v1338_v24, %v372_v13  ;;  %v401_v21 = vsel %vm46_vm0, %v1433_v12, 0.0  ;;  %v421_v27 = vmul.f32 %v1433_v12, %v1433_v12 }
 0x27e   :  { %402 = vadd.xlane.f32.xlu0 %v401_v21  ;;  %v1445_v22 = vadd.f32 %v1327_v19, %v364_v16  ;;  %v395_v23 = vsel %vm46_vm0, %v1437_v17, 0.0  ;;  %v419_v20 = vmul.f32 %v1437_v17, %v1437_v17 }
 0x27f   :  { %v404_v25 = vsel %vm46_vm0, %v1440_v18, 0.0  ;;  %v422_v29 = vmul.f32 %v1440_v18, %v1440_v18  ;;  %v441_v30 = vsel %vm46_vm0, %v421_v27, 0.0 }
 0x280   :  { %405 = vadd.xlane.f32.xlu1 %v404_v25  ;;  %v398_v24 = vsel %vm46_vm0, %v1445_v22, 0.0  ;;  %v420_v26 = vmul.f32 %v1445_v22, %v1445_v22  ;;  %v435_v19 = vsel %vm46_vm0, %v419_v20, 0.0 }
 0x281   :  { %v444_v31 = vsel %vm46_vm0, %v422_v29, 0.0 }
 0x282   :  { %396 = vadd.xlane.f32.xlu0 %v395_v23  ;;  %v438_v28 = vsel %vm46_vm0, %v420_v26, 0.0 }
 0x284   :  { %399 = vadd.xlane.f32.xlu1 %v398_v24 }
 0x286   :  { %436 = vadd.xlane.f32.xlu0 %v435_v19 }
 0x288   :  { %439 = vadd.xlane.f32.xlu1 %v438_v28 }
 0x28a   :  { %442 = vadd.xlane.f32.xlu0 %v441_v30 }
 0x28c   :  { %445 = vadd.xlane.f32.xlu1 %v444_v31 }
 0x2fb   :  { %v391_v33 = vpop.xlane.xlu0 %390 }
 0x2fc   :  { %v1468_v36 = vmul.f32 0.0625, %v391_v33 }
 0x2fd   :  { %v394_v34 = vpop.xlane.xlu1 %393 }
 0x2fe   :  { %v1470_v38 = vmul.f32 0.0625, %v394_v34  ;;  %v457_v40 = vmul.f32 %v1468_v36, %v1468_v36 }
 0x2ff   :  { %v385_v35 = vpop.xlane.xlu0 %384 }
 0x300   :  { %v1474_v45 = vmul.f32 0.0625, %v385_v35  ;;  %v458_v47 = vmul.f32 %v1470_v38, %v1470_v38  ;;  %v482_v30 = vsub.f32 %v1408_v59, %v1470_v38 }
 0x301   :  { %v388_v37 = vpop.xlane.xlu1 %387 }
 0x302   :  { %v1478_v48 = vmul.f32 0.0625, %v388_v37  ;;  %v455_v51 = vmul.f32 %v1474_v45, %v1474_v45 }
 0x303   :  { %v431_v39 = vpop.xlane.xlu0 %430 }
 0x304   :  { %v449_v46 = vmul.f32 0.0625, %v431_v39  ;;  %v456_v57 = vmul.f32 %v1478_v48, %v1478_v48 }
 0x305   :  { %v434_v42 = vpop.xlane.xlu1 %433 }
 0x306   :  { %v465_v49 = vsub.f32 %v449_v46, %v457_v40  ;;  %v450_v50 = vmul.f32 0.0625, %v434_v42  ;;  %v481_v46 = vsub.f32 %v1402_v55, %v1468_v36  ;;  %v479_v42 = vsub.f32 %v1405_v58, %v1474_v45 }
 0x307   :  { %v425_v41 = vpop.xlane.xlu0 %424 }
 0x308   :  { %v466_v52 = vsub.f32 %v450_v50, %v458_v47  ;;  %v447_v53 = vmul.f32 0.0625, %v425_v41  ;;  %v473_v54 = vmax.f32 %v465_v49, 0.0  ;;  %v480_v47 = vsub.f32 %v1413_v60, %v1478_v48 }
 0x309   :  { %v428_v56 = vpop.xlane.xlu1 %427 }
 0x30a   :  { %v474_v43 = vmax.f32 %v466_v52, 0.0  ;;  %v463_v44 = vsub.f32 %v447_v53, %v455_v51  ;;  %v448_v2 = vmul.f32 0.0625, %v428_v56  ;;  %v489_v5 = vadd.f32 1e-05, %v473_v54 }
 0x30b   :  { %v403_v61 = vpop.xlane.xlu0 %402 }
 0x30c   :  { %v490_v3 = vadd.f32 1e-05, %v474_v43  ;;  %v471_v4 = vmax.f32 %v463_v44, 0.0  ;;  %v464_v62 = vsub.f32 %v448_v2, %v456_v57  ;;  %v413_v13 = vmul.f32 0.0625, %v403_v61 }
 0x30d   :  { %v406_v63 = vpop.xlane.xlu1 %405 }
 0x30e   :  { %1225 = vrsqrt.f32 %v490_v3  ;;  %v487_v0 = vadd.f32 1e-05, %v471_v4  ;;  %v472_v1 = vmax.f32 %v464_v62, 0.0  ;;  %v414_v16 = vmul.f32 0.0625, %v406_v63 }
 0x30f   :  { %v397_v6 = vpop.xlane.xlu0 %396  ;;  %v461_v19 = vmul.f32 %v413_v13, %v413_v13 }
 0x310   :  { %1227 = vrsqrt.f32 %v487_v0  ;;  %v488_v7 = vadd.f32 1e-05, %v472_v1  ;;  %v411_v8 = vmul.f32 0.0625, %v397_v6  ;;  %v462_v31 = vmul.f32 %v414_v16, %v414_v16 }
 0x311   :  { %1229 = vrsqrt.f32 %v489_v5  ;;  %v400_v9 = vpop.xlane.xlu1 %399  ;;  %v485_v5 = vsub.f32 %v1433_v12, %v413_v13  ;;  %v486_v63 = vsub.f32 %v1440_v18, %v414_v16 }
 0x312   :  { %1231 = vrsqrt.f32 %v488_v7  ;;  %v412_v10 = vmul.f32 0.0625, %v400_v9  ;;  %v459_v14 = vmul.f32 %v411_v8, %v411_v8  ;;  %v483_v48 = vsub.f32 %v1437_v17, %v411_v8  ;;  %v1203_v8 = vld [vmem:[%s1603_s3 + $0x8] sm:$0xff]  }
 0x313   :  { %v437_v11 = vpop.xlane.xlu0 %436  ;;  %1160 = vmatprep.subr.bf16.mxu1 %v1203_v8 }
 0x314   :  { %v451_v15 = vmul.f32 0.0625, %v437_v11  ;;  %v460_v25 = vmul.f32 %v412_v10, %v412_v10  ;;  %v484_v2 = vsub.f32 %v1445_v22, %v412_v10  ;;  %1161 = vmatpush3.bf16.msra.mxu1 %v1203_v8  ;;  %v1046_v10 = vld [vmem:[%s1604_s2 + $0x1] ss:$0 sm:$0xff] }
 0x315   :  { %v440_v21 = vpop.xlane.xlu1 %439  ;;  %v1205_v8 = vld [vmem:[%s1607_s5] sm:$0xff]  }
 0x316   :  { %v467_v23 = vsub.f32 %v451_v15, %v459_v14  ;;  %v452_v20 = vmul.f32 0.0625, %v440_v21 }
 0x317   :  { %v443_v24 = vpop.xlane.xlu0 %442 }
 0x318   :  { %v1226_v26 = vpop.eup %1225  ;;  %v475_v27 = vmax.f32 %v467_v23, 0.0  ;;  %v468_v28 = vsub.f32 %v452_v20, %v460_v25  ;;  %v453_v29 = vmul.f32 0.0625, %v443_v24 }
 0x319   :  { %v446_v32 = vpop.xlane.xlu1 %445  ;;  %v506_v49 = vmul.f32 %v1226_v26, %v482_v30 }
 0x31a   :  { %v1228_v33 = vpop.eup %1227  ;;  %v491_v34 = vadd.f32 1e-05, %v475_v27  ;;  %v476_v35 = vmax.f32 %v468_v28, 0.0  ;;  %v469_v37 = vsub.f32 %v453_v29, %v461_v19  ;;  %v454_v39 = vmul.f32 0.0625, %v446_v32 }
 0x31b   :  { %v1230_v40 = vpop.eup %1229  ;;  %v503_v52 = vmul.f32 %v1228_v33, %v479_v42 }
 0x31c   :  { %v1232_v50 = vpop.eup %1231  ;;  %1233 = vrsqrt.f32 %v491_v34  ;;  %v492_v38 = vadd.f32 1e-05, %v476_v35  ;;  %v477_v41 = vmax.f32 %v469_v37, 0.0  ;;  %v470_v51 = vsub.f32 %v454_v39, %v462_v31 }
 0x31d   :  { %v504_v53 = vmul.f32 %v1232_v50, %v480_v47  ;;  %v505_v54 = vmul.f32 %v1230_v40, %v481_v46  ;;  %v1204_v50 = vld [vmem:[%s1606_s7] sm:$0xff]  }
 0x31e   :  { %1235 = vrsqrt.f32 %v492_v38  ;;  %v493_v56 = vadd.f32 1e-05, %v477_v41  ;;  %v478_v57 = vmax.f32 %v470_v51, 0.0  ;;  %1170 = vmatprep.subr.bf16.mxu0 %v1204_v50  ;;  %v1055_v38 = vld [vmem:[%s1605_s4 + $0x1] ss:$0 sm:$0xff] }
 0x31f   :  { %v511_v43 = vpack.c.bf16 %v504_v53, %v503_v52  ;;  %v512_v36 = vpack.c.bf16 %v506_v49, %v505_v54 }
 0x320   :  { %1237 = vrsqrt.f32 %v493_v56  ;;  %v494_v44 = vadd.f32 1e-05, %v478_v57 }
 0x321   :  { %1152 = vmatprep.mubr.msk.bf16.mxu0 %vm46_vm0, %v511_v43 }
 0x322   :  { %1239 = vrsqrt.f32 %v494_v44  ;;  %1153 = vmatmul.mubr.msk.bf16.vlgmr.msra.gmra.mrb[8].mxu0 %vm46_vm0, %v512_v36 }
 0x323   :  { %1171 = vmatpush3.bf16.msra.mxu0 %v1204_v50 }
 0x326   :  { %v1234_v45 = vpop.eup %1233 }
 0x327   :  { %v507_v3 = vmul.f32 %v1234_v45, %v483_v48 }
 0x328   :  { %v1236_v61 = vpop.eup %1235 }
 0x329   :  { %v508_v4 = vmul.f32 %v1236_v61, %v484_v2 }
 0x32a   :  { %v1238_v62 = vpop.eup %1237 }
 0x32b   :  { %v513_v0 = vpack.c.bf16 %v508_v4, %v507_v3  ;;  %v509_v6 = vmul.f32 %v1238_v62, %v485_v5 }
 0x32c   :  { %v1240_v1 = vpop.eup %1239 }
 0x32d   :  { %1156 = vmatprep.mubr.msk.bf16.mxu0 %vm46_vm0, %v513_v0  ;;  %v510_v7 = vmul.f32 %v1240_v1, %v486_v63 }
 0x32f   :  { %v514_v9 = vpack.c.bf16 %v510_v7, %v509_v6 }
 0x331   :  { %1157 = vmatmul.mubr.msk.bf16.gmra.mrb[12].mxu0 %vm46_vm0, %v514_v9 }
 0x3f5   :  { %v1154_v11 = vpop.f32.mrb[8].mxu0 }
 0x3f6   :  { %v587_v13 = vadd.f32 %v1154_v11, %v1046_v10  ;;  %v578_v14 = vpop.f32.mrb[9].mxu0 }
 0x3f7   :  { %v579_v15 = vadd.f32 %v1046_v10, %v578_v14  ;;  %v1155_v16 = vpop.f32.mrb[10].mxu0  ;;  %v1207_v14 = vld [vmem:[%s1607_s5] sm:$0xff]  }
 0x3f8   :  { %v590_v21 = vadd.f32 %v1155_v16, %v1046_v10  ;;  %v581_v25 = vpop.f32.mrb[11].mxu0  ;;  %v611_v20 = vmax.f32 %v587_v13, 0.0 }
 0x3f9   :  { %v582_v23 = vadd.f32 %v1046_v10, %v581_v25  ;;  %v609_v26 = vmax.f32 %v579_v15, 0.0 }
 0x3fa   :  { %v612_v24 = vmax.f32 %v590_v21, 0.0 }
 0x3fb   :  { %v610_v19 = vmax.f32 %v582_v23, 0.0 }
 0x3fc   :  { %v618_v27 = vpack.c.bf16 %v612_v24, %v611_v20  ;;  %v1208_v24 = vld [vmem:[%s1607_s5 + $0x8] sm:$0xff]  }
 0x3fd   :  { %v617_v28 = vpack.c.bf16 %v610_v19, %v609_v26  ;;  %v820_v26 = vld [vmem:[%s1608_s6 + $0x10] sm:$0xff]  ;;  %v818_v19 = vld [vmem:[%s1608_s6] sm:$0xff] }
 0x3ff   :  { %1162 = vmatprep.mubr.msk.bf16.mxu1 %vm46_vm0, %v617_v28  ;;  %v821_v28 = vld [vmem:[%s1608_s6 + $0x18] sm:$0xff] }
 0x400   :  { %1163 = vmatmul.mubr.msk.bf16.vlgmr.msra.gmra.mrb[8].mxu1 %vm46_vm0, %v618_v27 }
 0x404   :  { %v1158_v29 = vpop.f32.mrb[12].mxu0 }
 0x405   :  { %v603_v30 = vadd.f32 %v1158_v29, %v1046_v10  ;;  %v594_v31 = vpop.f32.mrb[13].mxu0 }
 0x406   :  { %v595_v32 = vadd.f32 %v1046_v10, %v594_v31  ;;  %v1159_v33 = vpop.f32.mrb[14].mxu0  ;;  %v819_v31 = vld [vmem:[%s1608_s6 + $0x8] sm:$0xff] }
 0x407   :  { %v606_v34 = vadd.f32 %v1159_v33, %v1046_v10  ;;  %v597_v35 = vpop.f32.mrb[15].mxu0  ;;  %v615_v39 = vmax.f32 %v603_v30, 0.0 }
 0x408   :  { %v598_v37 = vadd.f32 %v1046_v10, %v597_v35  ;;  %v613_v46 = vmax.f32 %v595_v32, 0.0 }
 0x409   :  { %v616_v40 = vmax.f32 %v606_v34, 0.0 }
 0x40a   :  { %v614_v42 = vmax.f32 %v598_v37, 0.0 }
 0x40b   :  { %v620_v47 = vpack.c.bf16 %v616_v40, %v615_v39 }
 0x40c   :  { %v619_v49 = vpack.c.bf16 %v614_v42, %v613_v46 }
 0x40e   :  { %1166 = vmatprep.mubr.msk.bf16.mxu1 %vm46_vm0, %v619_v49 }
 0x40f   :  { %1167 = vmatmul.mubr.msk.bf16.gmra.mrb[12].mxu1 %vm46_vm0, %v620_v47 }
 0x410   :  { %1184 = vmatprep.mubr.msk.bf16.mxu1 %vm832_vm1, %v1205_v8 }
 0x4d3   :  { %v1164_v41 = vpop.f32.mrb[8].mxu1 }
 0x4d4   :  { %v693_v51 = vadd.f32 %v1164_v41, %v1055_v38  ;;  %v684_v52 = vpop.f32.mrb[9].mxu1 }
 0x4d5   :  { %v685_v53 = vadd.f32 %v1055_v38, %v684_v52  ;;  %v1165_v54 = vpop.f32.mrb[10].mxu1 }
 0x4d6   :  { %v696_v56 = vadd.f32 %v1165_v54, %v1055_v38  ;;  %v687_v57 = vpop.f32.mrb[11].mxu1  ;;  %v717_v36 = vadd.f32 %v693_v51, %v1402_v55 }
 0x4d7   :  { %v688_v43 = vadd.f32 %v1055_v38, %v687_v57  ;;  %v715_v45 = vadd.f32 %v685_v53, %v1405_v58 }
 0x4d8   :  { %v718_v44 = vadd.f32 %v696_v56, %v1408_v59 }
 0x4d9   :  { %v716_v48 = vadd.f32 %v688_v43, %v1413_v60 }
 0x4da   :  { %v724_v2 = vpack.c.bf16 %v718_v44, %v717_v36 }
 0x4db   :  { %v723_v61 = vpack.c.bf16 %v716_v48, %v715_v45 }
 0x4dd   :  { %1172 = vmatprep.mubr.msk.bf16.mxu0 %vm46_vm0, %v723_v61 }
 0x4de   :  { %1173 = vmatmul.mubr.msk.bf16.vlgmr.msra.gmra.mrb[16].mxu0 %vm46_vm0, %v724_v2 }
 0x4e2   :  { %v1168_v3 = vpop.f32.mrb[12].mxu1 }
 0x4e3   :  { %v709_v4 = vadd.f32 %v1168_v3, %v1055_v38  ;;  %v700_v62 = vpop.f32.mrb[13].mxu1 }
 0x4e4   :  { %v701_v5 = vadd.f32 %v1055_v38, %v700_v62  ;;  %v1169_v63 = vpop.f32.mrb[14].mxu1 }
 0x4e5   :  { %v712_v0 = vadd.f32 %v1169_v63, %v1055_v38  ;;  %v703_v1 = vpop.f32.mrb[15].mxu1  ;;  %v721_v59 = vadd.f32 %v709_v4, %v1433_v12 }
 0x4e6   :  { %v704_v55 = vadd.f32 %v1055_v38, %v703_v1  ;;  %v719_v60 = vadd.f32 %v701_v5, %v1437_v17 }
 0x4e7   :  { %v722_v58 = vadd.f32 %v712_v0, %v1440_v18 }
 0x4e8   :  { %v720_v6 = vadd.f32 %v704_v55, %v1445_v22  ;;  %v1206_v22 = vld [vmem:[%s1607_s5 + $0x8] sm:$0xff]  }
 0x4e9   :  { %v726_v7 = vpack.c.bf16 %v722_v58, %v721_v59 }
 0x4ea   :  { %v725_v9 = vpack.c.bf16 %v720_v6, %v719_v60 }
 0x4ec   :  { %1176 = vmatprep.mubr.msk.bf16.mxu0 %vm46_vm0, %v725_v9 }
 0x4ed   :  { %1177 = vmatmul.mubr.msk.bf16.gmra.mrb[20].mxu0 %vm46_vm0, %v726_v7 }
 0x5b1   :  { %v1174_v12 = vpop.f32.mrb[16].mxu0 }
 0x5b2   :  { %v781_v10 = vpop.f32.mrb[17].mxu0 }
 0x5b3   :  { %v1175_v18 = vpop.f32.mrb[18].mxu0 }
 0x5b4   :  { %v813_v11 = vpack.c.bf16 %v1175_v18, %v1174_v12  ;;  %v784_v17 = vpop.f32.mrb[19].mxu0 }
 0x5b5   :  { %v812_v13 = vpack.c.bf16 %v784_v17, %v781_v10 }
 0x5b7   :  { %1180 = vmatprep.subr.bf16.mxu1 %v812_v13 }
 0x5b8   :  { %1181 = vmatpush3.bf16.msra.mxu1 %v812_v13 }
 0x5b9   :  { %1182 = vmatprep.subr.bf16.mxu1 %v813_v11 }
 0x5bc   :  { %1183 = vmatpush3.bf16.msra.mxu1 %v813_v11 }
 0x5bf   :  { %1185 = vmatmul.mubr.msk.bf16.vlgmr.msra.gmra.mrb[16].mxu1 %vm832_vm1, %v1206_v22 }
 0x5c0   :  { %v1178_v15 = vpop.f32.mrb[20].mxu0  ;;  %1192 = vmatprep.mubr.msk.bf16.mxu1 %vm832_vm1, %v1207_v14 }
 0x5c1   :  { %v797_v16 = vpop.f32.mrb[21].mxu0 }
 0x5c2   :  { %v1179_v21 = vpop.f32.mrb[22].mxu0 }
 0x5c3   :  { %v921_v25 = vpack.c.bf16 %v1179_v21, %v1178_v15  ;;  %v800_v23 = vpop.f32.mrb[23].mxu0 }
 0x5c4   :  { %v920_v20 = vpack.c.bf16 %v800_v23, %v797_v16 }
 0x5c6   :  { %1188 = vmatprep.subr.bf16.mxu1 %v920_v20 }
 0x5c7   :  { %1189 = vmatpush3.bf16.msra.mxu1 %v920_v20 }
 0x5c8   :  { %1190 = vmatprep.subr.bf16.mxu1 %v921_v25 }
 0x5cb   :  { %1191 = vmatpush3.bf16.msra.mxu1 %v921_v25 }
 0x5ce   :  { %1193 = vmatmul.mubr.msk.bf16.vlgmr.msra.gmra.mrb[20].mxu1 %vm832_vm1, %v1208_v24 }
 0x692   :  { %v1186_v27 = vpop.f32.mrb[16].mxu1 }
 0x693   :  { %v1553_v29 = vadd.f32 %v1186_v27, %v820_v26  ;;  %v873_v30 = vpop.f32.mrb[17].mxu1 }
 0x694   :  { %v874_v32 = vadd.f32 %v873_v30, %v818_v19  ;;  %v1187_v33 = vpop.f32.mrb[18].mxu1 }
 0x695   :  { %v885_v34 = vadd.f32 %v1187_v33, %v821_v28  ;;  %v876_v35 = vpop.f32.mrb[19].mxu1  ;;  %v890_v37 = vmul.f32 %v1553_v29, %v1553_v29 }
 0x696   :  { %v888_v39 = vmul.f32 %v874_v32, %v874_v32  ;;  %v877_v40 = vadd.f32 %v876_v35, %v819_v31 }
 0x697   :  { %v891_v42 = vmul.f32 %v885_v34, %v885_v34  ;;  %v896_v50 = vsel %vm892_vm2, %v890_v37, 0.0 }
 0x698   :  { %v893_v46 = vsel %vm892_vm2, %v888_v39, 0.0  ;;  %v889_v47 = vmul.f32 %v877_v40, %v877_v40 }
 0x699   :  { %v898_v41 = vsel %vm892_vm2, %v891_v42, 0.0 }
 0x69a   :  { %v894_v49 = vsel %vm892_vm2, %v889_v47, 0.0 }
 0x69b   :  { %v895_v38 = vadd.f32 %v894_v49, %v893_v46 }
 0x69d   :  { %v897_v51 = vadd.f32 %v896_v50, %v895_v38 }
 0x69f   :  { %v899_v52 = vadd.f32 %v898_v41, %v897_v51 }
 0x6a1   :  { %900 = vadd.xlane.f32.xlu0 %v899_v52  ;;  %v1194_v53 = vpop.f32.mrb[20].mxu1 }
 0x6a2   :  { %v980_v54 = vpop.f32.mrb[21].mxu1  ;;  %v989_v56 = vadd.f32 %v1194_v53, %v820_v26 }
 0x6a3   :  { %v981_v57 = vadd.f32 %v980_v54, %v818_v19  ;;  %v1195_v43 = vpop.f32.mrb[22].mxu1 }
 0x6a4   :  { %v983_v36 = vpop.f32.mrb[23].mxu1  ;;  %v992_v45 = vadd.f32 %v1195_v43, %v821_v28  ;;  %v997_v2 = vmul.f32 %v989_v56, %v989_v56 }
 0x6a5   :  { %v995_v44 = vmul.f32 %v981_v57, %v981_v57  ;;  %v984_v48 = vadd.f32 %v983_v36, %v819_v31 }
 0x6a6   :  { %v998_v4 = vmul.f32 %v992_v45, %v992_v45  ;;  %v1002_v63 = vsel %vm892_vm2, %v997_v2, 0.0 }
 0x6a7   :  { %v996_v61 = vmul.f32 %v984_v48, %v984_v48  ;;  %v999_v3 = vsel %vm892_vm2, %v995_v44, 0.0 }
 0x6a8   :  { %v1004_v1 = vsel %vm892_vm2, %v998_v4, 0.0 }
 0x6a9   :  { %v1000_v62 = vsel %vm892_vm2, %v996_v61, 0.0 }
 0x6aa   :  { %v1001_v5 = vadd.f32 %v1000_v62, %v999_v3 }
 0x6ac   :  { %v1003_v0 = vadd.f32 %v1002_v63, %v1001_v5 }
 0x6ae   :  { %v1005_v55 = vadd.f32 %v1004_v1, %v1003_v0 }
 0x6b0   :  { %1006 = vadd.xlane.f32.xlu1 %v1005_v55 }
 0x72e   :  { %v901_v59 = vpop.xlane.xlu0 %900 }
 0x72f   :  { %v902_v58 = vrot.slane %v901_v59, 4 }
 0x731   :  { %v903_v60 = vadd.f32 %v902_v58, %v901_v59 }
 0x733   :  { %v904_v6 = vrot.slane %v903_v60, 2 }
 0x735   :  { %v905_v7 = vadd.f32 %v904_v6, %v903_v60 }
 0x737   :  { %v906_v9 = vrot.slane %v905_v7, 1 }
 0x739   :  { %v907_v8 = vadd.f32 %v906_v9, %v905_v7 }
 0x73b   :  { %1196 = vpush %v907_v8 }
 0x73d   :  { %v1007_v12 = vpop.xlane.xlu1 %1006 }
 0x73e   :  { %v1008_v10 = vrot.slane %v1007_v12, 4 }
 0x740   :  { %v1009_v18 = vadd.f32 %v1008_v10, %v1007_v12 }
 0x742   :  { %v1010_v11 = vrot.slane %v1009_v18, 2 }
 0x744   :  { %v1011_v17 = vadd.f32 %v1010_v11, %v1009_v18 }
 0x746   :  { %v1012_v13 = vrot.slane %v1011_v17, 1 }
 0x748   :  { %v1013_v22 = vadd.f32 %v1012_v13, %v1011_v17 }
 0x74a   :  { %1198 = vpush %v1013_v22 }
 0x76c   :  { %s1197_s6 = spop %1196 }
 0x76d   :  { %v909_v14 = vstv %s1197_s6 }
 0x76e   :  { %v910_v15 = vmax.f32 %v909_v14, 1e-24 }
 0x770   :  { %1241 = vrsqrt.f32 %v910_v15 }
 0x77a   :  { %v1242_v16 = vpop.eup %1241 }
 0x77b   :  { %v912_v21 = vmul.f32 %v1242_v16, %v874_v32  ;;  %v913_v25 = vmul.f32 %v1242_v16, %v877_v40  ;;  %v914_v23 = vmul.f32 %v1242_v16, %v1553_v29  ;;  %v915_v20 = vmul.f32 %v1242_v16, %v885_v34  ;;  %s1199_s17 = spop %1198 }
 0x77c   :  { %v1015_v24 = vstv %s1199_s17 }
 0x77d   :  { %916 = vst.msk [vmem:[%s1609_s8] sm:$0xff] %vm892_vm2, %v912_v21  ;;  %917 = vst.msk [vmem:[%s1609_s8 + $0x8] sm:$0xff] %vm892_vm2, %v913_v25  ;;  %v1016_v26 = vmax.f32 %v1015_v24, 1e-24 }
 0x77e   :  { %918 = vst.msk [vmem:[%s1609_s8 + $0x10] sm:$0xff] %vm892_vm2, %v914_v23  ;;  %919 = vst.msk [vmem:[%s1609_s8 + $0x18] sm:$0xff] %vm892_vm2, %v915_v20 }
 0x77f   :  { %1243 = vrsqrt.f32 %v1016_v26 }
 0x789   :  { %v1244_v19 = vpop.eup %1243 }
 0x78a   :  { %v1018_v27 = vmul.f32 %v1244_v19, %v981_v57  ;;  %v1019_v28 = vmul.f32 %v1244_v19, %v984_v48  ;;  %v1020_v29 = vmul.f32 %v1244_v19, %v989_v56  ;;  %v1021_v30 = vmul.f32 %v1244_v19, %v992_v45 }
 0x78c   :  { %1074 = vst.msk [vmem:[%s1609_s8 + $0x20] sm:$0xff] %vm892_vm2, %v1018_v27  ;;  %1075 = vst.msk [vmem:[%s1609_s8 + $0x28] sm:$0xff] %vm892_vm2, %v1019_v28 }
 0x78d   :  { %1076 = vst.msk [vmem:[%s1609_s8 + $0x30] sm:$0xff] %vm892_vm2, %v1020_v29  ;;  %1077 = vst.msk [vmem:[%s1609_s8 + $0x38] sm:$0xff] %vm892_vm2, %v1021_v30 }

</bundles_post_ra>
